<compile_context>
chip_gen: v6e
topology: v6e:2x2x1
jax: 0.10.0
libtpu: 0.0.40
codegen_flags: <defaults>
</compile_context>

<pallas_src>
import time

import jax
import jax.numpy as jnp
from jax.experimental import pallas as pl
from jax.experimental.pallas import tpu as pltpu


def _round_up(x, m):
    return ((x + m - 1) // m) * m


# ----------------------------- Pallas kernel -------------------------------

def _conv_matmul_kernel(w_ref, p_ref, b_ref, o_ref):
    # w_ref: [Cout, K_pad]     bf16  (weights, same block every grid step)
    # p_ref: [K_pad, TILE_M]   bf16  (im2col patches, lane axis = M -> dense)
    # b_ref: [Cout, 1]         f32
    # o_ref: [Cout, TILE_M]    f32   (lane-dense output -> unmasked stores)
    acc = jnp.dot(w_ref[...], p_ref[...], preferred_element_type=jnp.float32)
    o_ref[...] = (acc + b_ref[...]).astype(o_ref.dtype)


def conv2d_pallas(x_nchw, weight_oihw, bias, *, padding=1, tile_m=256):
    """3x3 'same' conv (stride 1) via transposed im2col + Pallas MXU matmul.

    x_nchw:      [N, Cin, H, W]   float32
    weight_oihw: [Cout, Cin, KH, KW]
    bias:        [Cout]
    returns      [N, Cout, H, W]  (PyTorch NCHW semantics)
    """
    N, Cin, H, W = x_nchw.shape
    Cout, _, KH, KW = weight_oihw.shape
    M = N * H * W
    K = KH * KW * Cin

    # --- glue: NCHW -> NHWC, pad, transposed im2col [K, M] ---
    # K ordered (kh, kw, cin); M ordered (n, h, w).
    # TODO(synk): patch construction still materializes ~9x input bytes in HBM;
    # building patches inside the kernel from a haloed NHWC tile would remove it.
    x = jnp.transpose(x_nchw, (0, 2, 3, 1))                       # [N,H,W,Cin]
    xp = jnp.pad(x, ((0, 0), (padding, padding), (padding, padding), (0, 0)))
    taps = [xp[:, i:i + H, j:j + W, :] for i in range(KH) for j in range(KW)]
    patches = jnp.stack(taps, axis=0)                             # [KH*KW,N,H,W,Cin]
    patches_t = jnp.transpose(patches, (0, 4, 1, 2, 3)).reshape(K, M)

    # weight [Cout,Cin,KH,KW] -> [Cout,KH,KW,Cin] -> [Cout, K] (matches patch order)
    w_t = jnp.transpose(weight_oihw, (0, 2, 3, 1)).reshape(Cout, K)

    # bf16 operands at the kernel boundary; f32 bias / accumulation.
    patches_t = patches_t.astype(jnp.bfloat16)
    w_t = w_t.astype(jnp.bfloat16)
    b2d = bias.astype(jnp.float32).reshape(Cout, 1)

    # pad K to a sublane multiple and M to a tile multiple (zeros contribute 0)
    K_pad = _round_up(K, 8)
    tile_m = min(tile_m, _round_up(M, 128))
    M_pad = _round_up(M, tile_m)
    patches_t = jnp.pad(patches_t, ((0, K_pad - K), (0, M_pad - M)))
    w_t = jnp.pad(w_t, ((0, 0), (0, K_pad - K)))
    grid_m = M_pad // tile_m

    # --- hot path: tiled, pipelined Pallas matmul + bias ---
    out_t = pl.pallas_call(
        _conv_matmul_kernel,
        out_shape=jax.ShapeDtypeStruct((Cout, M_pad), jnp.float32),
        grid_spec=pltpu.PrefetchScalarGridSpec(
            num_scalar_prefetch=0,
            grid=(grid_m,),
            in_specs=[
                pl.BlockSpec((Cout, K_pad), lambda i: (0, 0)),
                pl.BlockSpec((K_pad, tile_m), lambda i: (0, i)),
                pl.BlockSpec((Cout, 1), lambda i: (0, 0)),
            ],
            out_specs=pl.BlockSpec((Cout, tile_m), lambda i: (0, i)),
        ),
        compiler_params=pltpu.CompilerParams(
            dimension_semantics=("parallel",)),   # megacore sharding on v7x
    )(w_t, patches_t, b2d)

    # --- glue: [Cout, M] -> NCHW ---
    out = out_t[:, :M].reshape(Cout, N, H, W)
    return jnp.transpose(out, (1, 0, 2, 3)).astype(x_nchw.dtype)


# --------------------------- Wrapper (profiler) -----------------------------

class PallasConvLayer:
    """Stand-in for the wrapped nn.Conv2d sub-module."""

    def __init__(self, in_channels, out_channels, kernel_size, key):
        kw, kb = jax.random.split(key)
        fan_in = in_channels * kernel_size * kernel_size
        bound = 1.0 / jnp.sqrt(fan_in)
        # mimics torch's default uniform(-1/sqrt(fan_in), 1/sqrt(fan_in)) init
        self.weight = jax.random.uniform(
            kw, (out_channels, in_channels, kernel_size, kernel_size),
            dtype=jnp.float32, minval=-bound, maxval=bound)
        self.bias = jax.random.uniform(
            kb, (out_channels,), dtype=jnp.float32, minval=-bound, maxval=bound)
        self._fwd = jax.jit(lambda x, w, b: conv2d_pallas(x, w, b))

    def parameters(self):
        return [self.weight, self.bias]

    def buffers(self):
        return []

    def __call__(self, x):
        return self._fwd(x, self.weight, self.bias)


class Wrapper:
    """Profiles a layer: measures forward wall-clock time (ms) and size (bytes)."""

    def __init__(self, sub_module, idx=0, device="tpu"):
        self.layer = sub_module
        self.device = device
        self.idx = idx
        self.forward_time = None
        self.backward_timestamp = None
        # TODO(synk): backward_hook timestamping has no Pallas-forward equivalent.
        self.size = self._layer_size()

    def _layer_size(self):
        size = 0
        for p in self.layer.parameters():
            size += p.size * p.dtype.itemsize
        for b in self.layer.buffers():
            size += b.size * b.dtype.itemsize
        return size

    def forward(self, *inputs):
        # Warm-up so the first-call trace/compile cost is excluded, then report
        # min-of-N (only reliable wall-clock for microsecond-scale kernels).
        out = self.layer(*inputs)
        jax.block_until_ready(out)
        times = []
        for _ in range(5):
            start = time.time()
            out = self.layer(*inputs)
            jax.block_until_ready(out)   # analogous to torch.cuda.synchronize()
            times.append(time.time() - start)
        self.forward_time = 1000.0 * min(times)
        return out

    __call__ = forward


# --------------------------------- main -------------------------------------

if __name__ == "__main__":
    key = jax.random.PRNGKey(0)
    k_x, k_layer = jax.random.split(key)

    N, Cin, H, W, Cout = 2, 4, 16, 16, 8
    x = jax.random.normal(k_x, (N, Cin, H, W), dtype=jnp.float32)

    layer = PallasConvLayer(Cin, Cout, 3, k_layer)
    wrapped = Wrapper(layer, idx=0, device="tpu")

    out = wrapped(x)
    out = jax.block_until_ready(out)
    assert out.shape == (N, Cout, H, W), out.shape

    # correctness check against a pure-JAX conv using the same bf16 operand
    # precision / f32 accumulation as the kernel
    ref = jax.lax.conv_general_dilated(
        x.astype(jnp.bfloat16), layer.weight.astype(jnp.bfloat16),
        window_strides=(1, 1), padding="SAME",
        dimension_numbers=("NCHW", "OIHW", "NCHW"),
        preferred_element_type=jnp.float32)
    ref = ref + layer.bias.reshape(1, Cout, 1, 1)
    assert jnp.allclose(out, ref, atol=2e-3, rtol=2e-3), \
        float(jnp.max(jnp.abs(out - ref)))

    assert wrapped.forward_time is not None and wrapped.forward_time >= 0.0
    assert wrapped.size == sum(p.size * p.dtype.itemsize for p in layer.parameters())

    print("KERNEL_OK")
</pallas_src>

<mosaic_0001>
module attributes {stable_mosaic.version = 11 : i64} {
  func.func @_conv_matmul_kernel(%arg0: i32, %arg1: memref<8x40xbf16, #tpu.memory_space<vmem>>, %arg2: memref<40x256xbf16, #tpu.memory_space<vmem>>, %arg3: memref<8x1xf32, #tpu.memory_space<vmem>>, %arg4: memref<8x256xf32, #tpu.memory_space<vmem>>) attributes {dimension_semantics = [#tpu.dimension_semantics<parallel>], iteration_bounds = array<i64: 2>, scalar_prefetch = 0 : i64, scratch_operands = 0 : i64, tpu.core_type = #tpu.core_type<tc>, window_params = [{pipeline_mode = #tpu.pipeline_mode<synchronous>, transform_indices = @transform_0, window_bounds = array<i64: 8, 40>}, {transform_indices = @transform_1, window_bounds = array<i64: 40, 256>}, {pipeline_mode = #tpu.pipeline_mode<synchronous>, transform_indices = @transform_2, window_bounds = array<i64: 8, 1>}, {transform_indices = @transform_3, window_bounds = array<i64: 8, 256>}]} {
    %c0 = arith.constant 0 : index
    %c0_0 = arith.constant 0 : index
    %0 = vector.load %arg1[%c0, %c0_0] : memref<8x40xbf16, #tpu.memory_space<vmem>>, vector<8x40xbf16>
    %c0_1 = arith.constant 0 : index
    %c0_2 = arith.constant 0 : index
    %1 = vector.load %arg2[%c0_1, %c0_2] : memref<40x256xbf16, #tpu.memory_space<vmem>>, vector<40x256xbf16>
    %cst = arith.constant dense<0.000000e+00> : vector<8x256xf32>
    %2 = tpu.matmul %0, %1, %cst {dimension_numbers = #tpu.dot_dimension_numbers<[1], [0], [0], [1], [0, 0, 1, 1], [], []>} : vector<8x40xbf16>, vector<40x256xbf16>, vector<8x256xf32> -> vector<8x256xf32>
    %c0_3 = arith.constant 0 : index
    %c0_4 = arith.constant 0 : index
    %3 = vector.load %arg3[%c0_3, %c0_4] : memref<8x1xf32, #tpu.memory_space<vmem>>, vector<8x1xf32>
    %4 = vector.broadcast %3 : vector<8x1xf32> to vector<8x256xf32>
    %5 = arith.addf %2, %4 : vector<8x256xf32>
    %c0_5 = arith.constant 0 : index
    %c0_6 = arith.constant 0 : index
    %6 = vector.load %arg4[%c0_5, %c0_6] : memref<8x256xf32, #tpu.memory_space<vmem>>, vector<8x256xf32>
    tpu.vector_store %arg4[%c0_5, %c0_6], %5 {strides = array<i32>} : memref<8x256xf32, #tpu.memory_space<vmem>>, vector<8x256xf32>,
    return
  }
  func.func @transform_0(%arg0: i32) -> (i32, i32) {
    %c0_i32 = arith.constant 0 : i32
    %c0_i32_0 = arith.constant 0 : i32
    %c0_i32_1 = arith.constant 0 : i32
    return %c0_i32, %c0_i32_0 : i32, i32
  }
  func.func @transform_1(%arg0: i32) -> (i32, i32) {
    %c0_i32 = arith.constant 0 : i32
    %c0_i32_0 = arith.constant 0 : i32
    return %c0_i32, %arg0 : i32, i32
  }
  func.func @transform_2(%arg0: i32) -> (i32, i32) {
    %c0_i32 = arith.constant 0 : i32
    %c0_i32_0 = arith.constant 0 : i32
    %c0_i32_1 = arith.constant 0 : i32
    return %c0_i32, %c0_i32_0 : i32, i32
  }
  func.func @transform_3(%arg0: i32) -> (i32, i32) {
    %c0_i32 = arith.constant 0 : i32
    %c0_i32_0 = arith.constant 0 : i32
    return %c0_i32, %arg0 : i32, i32
  }
}

</mosaic_0001>

<bundles_post_ra>
// kernel: _lambda_.1
= control target key start
LH: loop header
LB: loop body
LE: loop exit
PB: predicated region body
PF: predicated region fallthrough
CT: control target
= control target key end

     0   :  { %s480_s12 = smov 0   ;;  %s482_s13 = smov 0   ;;  %s538_s0 = inlined_call_operand.vmem [shape: bf16[8,40], index: 0, kind: input, shape index: {}]   ;;  %s539_s1 = inlined_call_operand.vmem [shape: bf16[40,512], index: 1, kind: input, shape index: {}]   ;;  %s540_s2 = inlined_call_operand.vmem [shape: f32[8,1], index: 2, kind: input, shape index: {}]   ;;  %s541_s3 = inlined_call_operand.vmem [shape: f32[8,512], index: 3, kind: output, shape index: {}]  }
   0x1   :  { %s484_s14 = smov 0  }
   0x2 LB: > { %s379_s15 = sadd.s32 4294967295, %s457_s14   ;;  %s497_s16 = sadd.s32 1, %s457_s14   ;;  %s457_s14 = sphi %s484_s14, %s544_s14   ;;  %s453_s13 = sphi %s482_s13, %s543_s13   ;;  %s449_s12 = sphi %s480_s12, %s542_s12  }
   0x3   : > { %s38_s17 = ssub.s32 %s457_s14, %s497_s16  ;;  %s41_s18 = sadd.s32 1, %s453_s13 }
   0x4   : > { %p39_p0 = scmp.eq.s32.totalorder %s38_s17, 0  ;;  %p48_p1 = scmp.ne.s32.totalorder %s453_s13, %s449_s12 }
   0x5   : > { %p49_p2 = scmp.eq.s32.totalorder %s457_s14, 0  ;;  %p382_p4 = scmp.ge.s32.totalorder %s457_s14, 2 }
   0x6   : > { %s506_s19 = scalar_select %p39_p0, %s453_s13, %s41_s18  }
   0x7   : > { %p50_p3 = por %p49_p2, %p48_p1  ;;  %127 = sbr.rel (%p382_p4) target bundleno = 19 (0x13), region = 24 }
   0xc   : > { %130 = sbr.rel (!%p50_p3) target bundleno = 19 (0x13), region = 28  ;;  %s132_s20 = sand.u32 (%p50_p3), 1, %s453_s13  }
   0xd   : > { %s398_s21 = sshll.u32 (%p50_p3), %s457_s14, 3  ;;  %s399_s22 = smul.u32 (%p50_p3), 40, %s132_s20 }
   0xe   : > { %s137_s25 = scalar_lea.vmem (%p50_p3), %s539_s1, %s398_s21 }
   0xf   : > { %v174_v0 = vld [vmem:[%s137_s25] sm:$0xff] (%p50_p3)  ;;  %v176_v1 = vld [vmem:[%s137_s25 + $0x10] sm:$0xff] (%p50_p3)  ;;  %s134_s26 = scalar_lea.vmem (%p50_p3), [#allocation2], %s399_s22 }
  0x10   : > { %v178_v2 = vld [vmem:[%s137_s25 + $0x20] sm:$0xff] (%p50_p3)  ;;  %v180_v3 = vld [vmem:[%s137_s25 + $0x30] sm:$0xff] (%p50_p3)  ;;  %175 = vst [vmem:[%s134_s26] sm:$0xff] (%p50_p3), %v174_v0  ;;  %177 = vst [vmem:[%s134_s26 + $0x8] sm:$0xff] (%p50_p3), %v176_v1 }
  0x11   : > { %v182_v4 = vld [vmem:[%s137_s25 + $0x40] sm:$0xff]  ;;  %179 = vst [vmem:[%s134_s26 + $0x10] sm:$0xff] %v178_v2  ;;  %181 = vst [vmem:[%s134_s26 + $0x18] sm:$0xff] %v180_v3 }
  0x12   : > { %183 = vst [vmem:[%s134_s26 + $0x20] sm:$0xff] %v182_v4 }
  0x13 PF: > { %p385_p5 = scmp.ge.s32.totalorder %s457_s14, 1  ;;  %p188_p6 = scmp.lt.s32.totalorder %s457_s14, 3 }
  0x15   : > { %p189_p7 = pnand %p385_p5, %p188_p6 }
  0x16   : > { %s195_s27 = sand.u32 (!%p189_p7), 1, %s449_s12   ;;  %s386_s7 = sshll.u32 (!%p189_p7), %s379_s15, 1 }
  0x17   : > { %192 = sbr.rel (%p189_p7) target bundleno = 243 (0xf3), region = 66  ;;  %p220_p8 = scmp.lt.s32.totalorder (!%p189_p7), %s386_s7, 3 }
  0x18   : > { %s400_s28 = smul.u32 (!%p189_p7), 40, %s195_s27 }
  0x1a   : > { %s197_s4 = scalar_lea.vmem (!%p189_p7), [#allocation2], %s400_s28 }
  0x1c   : > { %v459_v5 = vmov 0   ;;  %v232_v6 = vld [vmem:[%s540_s2] sm:$0xff]  ;;  %vm267_vm0 = vcmask 1043456   ;;  %vm263_vm1 = vcmask 326656   ;;  %s546_s7 = smov (!%p220_p8, %s386_s7), 3 }
  0x1d   : > { %306 = vmatprep.mubr.bf16.mxu0 %v459_v5  ;;  %426 = vset.pattern.permute.xlu0 %v459_v5  ;;  %v231_v7 = vld [vmem:[%s197_s4 + $0x20] sm:$0xff]  ;;  %v429_v10 = vld [vmem:[%s197_s4 + $0x14] ss:$8 sps:$4 sm:$0xff]   ;;  %v431_v12 = vld [vmem:[%s197_s4 + $0x10] ss:$8 sps:$4 sm:$0xff]   ;;  %s387_s8 = sshll.u32 %s546_s7, 3 }
  0x1e   : > { %235 = vperm.xlu0 %426, %v232_v6   ;;  %v393_v8 = vcombine.high %v231_v7, %v231_v7  ;;  %v392_v9 = vcombine.low %v231_v7, %v231_v7  ;;  %v432_v13 = vld [vmem:[%s197_s4 + $0x4] ss:$8 sps:$4 sm:$0xff]   ;;  %v434_v14 = vld [vmem:[%s197_s4] ss:$8 sps:$4 sm:$0xff]   ;;  %s223_s11 = scalar_lea.vmem %s541_s3, %s387_s8 }
  0x1f   : > { %v226_v15 = vld [vmem:[%s538_s0] sm:$0xf] }
  0x20   : > { %394 = vmatprep.subr.msk.bf16.mxu0 %vm267_vm0, %v393_v8  ;;  %v269_v11 = vsel %vm267_vm0, %v392_v9, 0 }
  0x21   : > { %285 = vmatpush1.bf16.msra.mxu0 %v269_v11 }
  0x22   : > { %286 = vmatprep.subr.bf16.mxu0 %v429_v10 }
  0x25   : > { %287 = vmatpush1.bf16.msra.mxu0 %v431_v12 }
  0x26   : > { %288 = vmatprep.subr.bf16.mxu0 %v432_v13 }
  0x29   : > { %289 = vmatpush1.bf16.msra.mxu0 %v434_v14 }
  0x2c   : > { %395 = vmatmul.mubr.msk.bf16.vlgmr.msra.gmra.mxu0 %vm263_vm1, %v226_v15 }
  0x99   : > { %v236_v16 = vpop.permute.xlu0 %235 }
  0xec   : > { %v308_v17 = vpop.f32.mrf.mxu0 }
  0xed   : > { %v309_v18 = vadd.f32 %v308_v17, %v236_v16 }
  0xee   : > { %v310_v19 = vpop.f32.mrf.mxu0 }
  0xef   : > { %315 = vst [vmem:[%s223_s11] sm:$0xff] %v309_v18  ;;  %v311_v20 = vadd.f32 %v310_v19, %v236_v16 }
  0xf0   : > { %v312_v21 = vpop.f32.mrf.mxu0 }
  0xf1   : > { %316 = vst [vmem:[%s223_s11 + $0x8] sm:$0xff] %v311_v20 }
  0xf2   : > { %v313_v22 = vpop.f32.mrf.mxu0 }
  0xf3 PF: > { %p10_p9 = scmp.ge.s32.totalorder %s497_s16, 4   ;;  %s542_s12 = smov %s453_s13 }
  0xf4   : > { %s543_s13 = smov %s506_s19  ;;  %s544_s14 = smov %s497_s16 }
  0xf5   :  { %12 = sbr.rel (!%p10_p9) target bundleno = 2 (0x2), region = 105 }

</bundles_post_ra>
